<compile_context>
chip_gen: v6e
topology: v6e:2x2x1
jax: 0.10.0
libtpu: 0.0.40
codegen_flags: <defaults>
</compile_context>

<pallas_src>
import functools

import jax
import jax.numpy as jnp
from jax import lax
from jax.experimental import pallas as pl
from jax.experimental.pallas import tpu as pltpu


_LANES = 512                      # preferred lane-dense last dim (multiple of 128)
_DEFAULT_BLOCK_ELEMS = 512 * 1024  # ~2 MiB per f32 operand block (1 MiB for bf16)


def _round_up(x, m):
    return ((x + m - 1) // m) * m


# ---------------------------------------------------------------------------
# Pallas kernel: per-tile per-lane partial sums in VMEM, finalize to SMEM scalar.
# ---------------------------------------------------------------------------
def _iou_loss_kernel(x_ref, t_ref, out_ref, inter_acc, total_acc, *,
                     smooth, n_valid, lanes, tb, needs_mask):
    i = pl.program_id(0)

    @pl.when(i == 0)
    def _init():
        inter_acc[...] = jnp.zeros_like(inter_acc)
        total_acc[...] = jnp.zeros_like(total_acc)

    # Upcast in-kernel (inputs travel over HBM in their native, possibly narrow, dtype).
    x = x_ref[...].astype(jnp.float32)           # [tb, lanes] logits
    t = t_ref[...].astype(jnp.float32)           # [tb, lanes] targets
    # sigmoid(x) == 0.5*(1+tanh(x/2)): single EUP transcendental instead of exp+divide.
    p = 0.5 * (1.0 + jnp.tanh(0.5 * x))

    pt = p * t
    st = p + t
    if needs_mask:  # static Python flag: only emitted when a tail exists
        base = i * (tb * lanes)
        row_ids = lax.broadcasted_iota(jnp.int32, (tb, lanes), 0)
        lane_ids = lax.broadcasted_iota(jnp.int32, (tb, lanes), 1)
        flat_idx = base + row_ids * lanes + lane_ids
        mask = flat_idx < n_valid
        pt = jnp.where(mask, pt, 0.0)
        st = jnp.where(mask, st, 0.0)

    # Sublane (VPU) reductions into per-lane f32 accumulators; no per-tile XLU reduce.
    inter_acc[...] += jnp.sum(pt, axis=0, keepdims=True)
    total_acc[...] += jnp.sum(st, axis=0, keepdims=True)

    @pl.when(i == pl.num_programs(0) - 1)
    def _finalize():
        intersection = jnp.sum(inter_acc[...])
        total = jnp.sum(total_acc[...])
        union = total - intersection
        out_ref[0, 0] = 1.0 - (intersection + smooth) / (union + smooth)


# ---------------------------------------------------------------------------
# Wrapper
# ---------------------------------------------------------------------------
def iou_loss(inputs, targets, smooth=1e-7, *, max_block_elems=_DEFAULT_BLOCK_ELEMS):
    """inputs: logits [B, 1, H, W]; targets: masks [B, 1, H, W]. Returns scalar loss.

    Inputs/targets are consumed in their native dtype (f32 / bf16 / int8 / bool); the
    upcast to f32 happens per-tile inside the kernel.
    """
    x = inputs.reshape(-1)    # contiguous reshape: free, no HBM copy, no dtype cast
    t = targets.reshape(-1)
    n = int(x.shape[0])

    # Lane-dense 2D view without copying whenever N divides a lane width.
    lanes = _LANES if n % _LANES == 0 else 128
    padded_n = _round_up(n, lanes)
    if padded_n != n:
        # TODO(synk): rare fallback (N not a multiple of 128) costs one extra HBM pass;
        # padded elements are masked out in-kernel, so any pad value is fine.
        x = jnp.pad(x, (0, padded_n - n))
        t = jnp.pad(t, (0, padded_n - n))

    rows = padded_n // lanes
    # When tiling, the sublane dim must be a multiple of 32 (safe for f32/bf16/int8);
    # a single full-extent block is always legal regardless of `rows`.
    tb_cap = max(32, (max_block_elems // lanes) // 32 * 32)
    tb = rows if rows <= tb_cap else tb_cap
    grid = pl.cdiv(rows, tb)
    needs_mask = (grid * tb * lanes) != n   # tail rows/elements to ignore

    x2 = x.reshape(rows, lanes)
    t2 = t.reshape(rows, lanes)

    kernel = functools.partial(
        _iou_loss_kernel,
        smooth=float(smooth), n_valid=n,
        lanes=int(lanes), tb=int(tb), needs_mask=bool(needs_mask))

    out = pl.pallas_call(
        kernel,
        out_shape=jax.ShapeDtypeStruct((1, 1), jnp.float32),
        grid=(grid,),
        in_specs=[
            pl.BlockSpec((tb, lanes), lambda i: (i, 0)),
            pl.BlockSpec((tb, lanes), lambda i: (i, 0)),
        ],
        out_specs=pl.BlockSpec(
            (1, 1), lambda i: (0, 0), memory_space=pltpu.MemorySpace.SMEM),
        scratch_shapes=[
            pltpu.VMEM((1, lanes), jnp.float32),   # per-lane intersection partials
            pltpu.VMEM((1, lanes), jnp.float32),   # per-lane total partials
        ],
        compiler_params=pltpu.CompilerParams(
            dimension_semantics=("arbitrary",),    # reduction axis (resident accumulators)
            vmem_limit_bytes=32 * 1024 * 1024,     # safe on v5e/v6e/v7x
        ),
    )(x2, t2)
    return out[0, 0]


# ---------------------------------------------------------------------------
# Pure-JAX reference (verification only)
# ---------------------------------------------------------------------------
def _reference(inputs, targets, smooth=1e-7):
    p = jax.nn.sigmoid(inputs.astype(jnp.float32)).reshape(-1)
    t = targets.astype(jnp.float32).reshape(-1)
    intersection = jnp.sum(p * t)
    total = jnp.sum(p + t)
    union = total - intersection
    return 1.0 - (intersection + smooth) / (union + smooth)


if __name__ == "__main__":
    key = jax.random.PRNGKey(0)
    k1, k2, k3, k4, k5, k6 = jax.random.split(key, 6)

    # Primary case: [B, 1, H, W] bf16 logits + bf16 binary masks (narrow HBM traffic).
    B, C, H, W = 2, 1, 16, 16
    inputs = (2.0 * jax.random.normal(k1, (B, C, H, W), jnp.float32)).astype(jnp.bfloat16)
    targets = (jax.random.uniform(k2, (B, C, H, W)) > 0.5).astype(jnp.bfloat16)
    loss = jax.block_until_ready(iou_loss(inputs, targets, smooth=1e-7))
    ref = _reference(inputs, targets, smooth=1e-7)
    assert jnp.allclose(loss, ref, rtol=1e-4, atol=1e-4), (float(loss), float(ref))

    # Multi-tile accumulation path (small forced block -> grid of 2 reduction steps).
    inputs2 = (2.0 * jax.random.normal(k3, (2, 1, 128, 128), jnp.float32)).astype(jnp.bfloat16)
    targets2 = (jax.random.uniform(k4, (2, 1, 128, 128)) > 0.5).astype(jnp.bfloat16)
    loss2 = jax.block_until_ready(iou_loss(inputs2, targets2, max_block_elems=16384))
    ref2 = _reference(inputs2, targets2)
    assert jnp.allclose(loss2, ref2, rtol=1e-4, atol=1e-4), (float(loss2), float(ref2))

    # Masked-tail path (element count not a multiple of 128), f32 inputs.
    inputs3 = 2.0 * jax.random.normal(k5, (2, 1, 15, 15), jnp.float32)
    targets3 = (jax.random.uniform(k6, (2, 1, 15, 15)) > 0.5).astype(jnp.float32)
    loss3 = jax.block_until_ready(iou_loss(inputs3, targets3))
    ref3 = _reference(inputs3, targets3)
    assert jnp.allclose(loss3, ref3, rtol=1e-4, atol=1e-4), (float(loss3), float(ref3))

    print("KERNEL_OK")
</pallas_src>

<mosaic_0001>
module attributes {stable_mosaic.version = 11 : i64} {
  func.func @_iou_loss_kernel(%arg0: i32, %arg1: memref<1x512xbf16, #tpu.memory_space<vmem>>, %arg2: memref<1x512xbf16, #tpu.memory_space<vmem>>, %arg3: memref<1x1xf32, #tpu.memory_space<smem>>, %arg4: memref<1x512xf32, #tpu.memory_space<vmem>>, %arg5: memref<1x512xf32, #tpu.memory_space<vmem>>) attributes {dimension_semantics = [#tpu.dimension_semantics<arbitrary>], iteration_bounds = array<i64: 1>, scalar_prefetch = 0 : i64, scratch_operands = 2 : i64, tpu.core_type = #tpu.core_type<tc>, window_params = [{transform_indices = @transform_0, window_bounds = array<i64: 1, 512>}, {transform_indices = @transform_1, window_bounds = array<i64: 1, 512>}, {transform_indices = @transform_2, window_bounds = array<i64: 1, 1>}]} {
    %c0_i32 = arith.constant 0 : i32
    %0 = arith.cmpi eq, %arg0, %c0_i32 : i32
    %1 = arith.extui %0 : i1 to i32
    %c0_i32_0 = arith.constant 0 : i32
    %2 = arith.cmpi ne, %1, %c0_i32_0 : i32
    scf.if %2 {
      %cst_18 = arith.constant 0.000000e+00 : f32
      %29 = vector.broadcast %cst_18 : f32 to vector<1x512xf32>
      %c0_19 = arith.constant 0 : index
      %c0_20 = arith.constant 0 : index
      %30 = vector.load %arg4[%c0_19, %c0_20] : memref<1x512xf32, #tpu.memory_space<vmem>>, vector<1x512xf32>
      tpu.vector_store %arg4[%c0_19, %c0_20], %29 {strides = array<i32>} : memref<1x512xf32, #tpu.memory_space<vmem>>, vector<1x512xf32>,
      %cst_21 = arith.constant 0.000000e+00 : f32
      %31 = vector.broadcast %cst_21 : f32 to vector<1x512xf32>
      %c0_22 = arith.constant 0 : index
      %c0_23 = arith.constant 0 : index
      %32 = vector.load %arg5[%c0_22, %c0_23] : memref<1x512xf32, #tpu.memory_space<vmem>>, vector<1x512xf32>
      tpu.vector_store %arg5[%c0_22, %c0_23], %31 {strides = array<i32>} : memref<1x512xf32, #tpu.memory_space<vmem>>, vector<1x512xf32>,
    } else {
    }
    %c0 = arith.constant 0 : index
    %c0_1 = arith.constant 0 : index
    %3 = vector.load %arg1[%c0, %c0_1] : memref<1x512xbf16, #tpu.memory_space<vmem>>, vector<1x512xbf16>
    %4 = arith.extf %3 : vector<1x512xbf16> to vector<1x512xf32>
    %c0_2 = arith.constant 0 : index
    %c0_3 = arith.constant 0 : index
    %5 = vector.load %arg2[%c0_2, %c0_3] : memref<1x512xbf16, #tpu.memory_space<vmem>>, vector<1x512xbf16>
    %6 = arith.extf %5 : vector<1x512xbf16> to vector<1x512xf32>
    %cst = arith.constant 5.000000e-01 : f32
    %7 = vector.broadcast %cst : f32 to vector<1x512xf32>
    %8 = arith.mulf %7, %4 : vector<1x512xf32>
    %9 = math.tanh %8 : vector<1x512xf32>
    %cst_4 = arith.constant 1.000000e+00 : f32
    %10 = vector.broadcast %cst_4 : f32 to vector<1x512xf32>
    %11 = arith.addf %10, %9 : vector<1x512xf32>
    %cst_5 = arith.constant 5.000000e-01 : f32
    %12 = vector.broadcast %cst_5 : f32 to vector<1x512xf32>
    %13 = arith.mulf %12, %11 : vector<1x512xf32>
    %14 = arith.mulf %13, %6 : vector<1x512xf32>
    %15 = arith.addf %13, %6 : vector<1x512xf32>
    %c0_6 = arith.constant 0 : index
    %c0_7 = arith.constant 0 : index
    %16 = vector.load %arg4[%c0_6, %c0_7] : memref<1x512xf32, #tpu.memory_space<vmem>>, vector<1x512xf32>
    %cst_8 = arith.constant dense<0.000000e+00> : vector<512xf32>
    %17 = vector.multi_reduction <add>, %14, %cst_8 [0] : vector<1x512xf32> to vector<512xf32>
    %18 = vector.shape_cast %17 : vector<512xf32> to vector<1x512xf32>
    %19 = arith.addf %16, %18 : vector<1x512xf32>
    %c0_9 = arith.constant 0 : index
    %c0_10 = arith.constant 0 : index
    %20 = vector.load %arg4[%c0_9, %c0_10] : memref<1x512xf32, #tpu.memory_space<vmem>>, vector<1x512xf32>
    tpu.vector_store %arg4[%c0_9, %c0_10], %19 {strides = array<i32>} : memref<1x512xf32, #tpu.memory_space<vmem>>, vector<1x512xf32>,
    %c0_11 = arith.constant 0 : index
    %c0_12 = arith.constant 0 : index
    %21 = vector.load %arg5[%c0_11, %c0_12] : memref<1x512xf32, #tpu.memory_space<vmem>>, vector<1x512xf32>
    %cst_13 = arith.constant dense<0.000000e+00> : vector<512xf32>
    %22 = vector.multi_reduction <add>, %15, %cst_13 [0] : vector<1x512xf32> to vector<512xf32>
    %23 = vector.shape_cast %22 : vector<512xf32> to vector<1x512xf32>
    %24 = arith.addf %21, %23 : vector<1x512xf32>
    %c0_14 = arith.constant 0 : index
    %c0_15 = arith.constant 0 : index
    %25 = vector.load %arg5[%c0_14, %c0_15] : memref<1x512xf32, #tpu.memory_space<vmem>>, vector<1x512xf32>
    tpu.vector_store %arg5[%c0_14, %c0_15], %24 {strides = array<i32>} : memref<1x512xf32, #tpu.memory_space<vmem>>, vector<1x512xf32>,
    %c0_i32_16 = arith.constant 0 : i32
    %26 = arith.cmpi eq, %arg0, %c0_i32_16 : i32
    %27 = arith.extui %26 : i1 to i32
    %c0_i32_17 = arith.constant 0 : i32
    %28 = arith.cmpi ne, %27, %c0_i32_17 : i32
    scf.if %28 {
      %c0_18 = arith.constant 0 : index
      %c0_19 = arith.constant 0 : index
      %29 = vector.load %arg4[%c0_18, %c0_19] : memref<1x512xf32, #tpu.memory_space<vmem>>, vector<1x512xf32>
      %30 = vector.shape_cast %29 : vector<1x512xf32> to vector<1x1x512xf32>
      %cst_20 = arith.constant dense<0.000000e+00> : vector<1xf32>
      %31 = vector.multi_reduction <add>, %30, %cst_20 [1, 2] : vector<1x1x512xf32> to vector<1xf32>
      %32 = vector.shape_cast %31 : vector<1xf32> to vector<1x1x1xf32>
      %33 = vector.extract %32[0, 0, 0] : f32 from vector<1x1x1xf32>
      %c0_21 = arith.constant 0 : index
      %c0_22 = arith.constant 0 : index
      %34 = vector.load %arg5[%c0_21, %c0_22] : memref<1x512xf32, #tpu.memory_space<vmem>>, vector<1x512xf32>
      %35 = vector.shape_cast %34 : vector<1x512xf32> to vector<1x1x512xf32>
      %cst_23 = arith.constant dense<0.000000e+00> : vector<1xf32>
      %36 = vector.multi_reduction <add>, %35, %cst_23 [1, 2] : vector<1x1x512xf32> to vector<1xf32>
      %37 = vector.shape_cast %36 : vector<1xf32> to vector<1x1x1xf32>
      %38 = vector.extract %37[0, 0, 0] : f32 from vector<1x1x1xf32>
      %39 = arith.subf %38, %33 : f32
      %cst_24 = arith.constant 1.000000e-07 : f32
      %40 = arith.addf %33, %cst_24 : f32
      %cst_25 = arith.constant 1.000000e-07 : f32
      %41 = arith.addf %39, %cst_25 : f32
      %42 = arith.divf %40, %41 : f32
      %cst_26 = arith.constant 1.000000e+00 : f32
      %43 = arith.subf %cst_26, %42 : f32
      %c0_27 = arith.constant 0 : index
      %c0_28 = arith.constant 0 : index
      %44 = memref.load %arg3[%c0_27, %c0_28] : memref<1x1xf32, #tpu.memory_space<smem>>
      memref.store %43, %arg3[%c0_27, %c0_28] : memref<1x1xf32, #tpu.memory_space<smem>>
    } else {
    }
    return
  }
  func.func @transform_0(%arg0: i32) -> (i32, i32) {
    %c0_i32 = arith.constant 0 : i32
    %c0_i32_0 = arith.constant 0 : i32
    return %arg0, %c0_i32 : i32, i32
  }
  func.func @transform_1(%arg0: i32) -> (i32, i32) {
    %c0_i32 = arith.constant 0 : i32
    %c0_i32_0 = arith.constant 0 : i32
    return %arg0, %c0_i32 : i32, i32
  }
  func.func @transform_2(%arg0: i32) -> (i32, i32) {
    %c0_i32 = arith.constant 0 : i32
    %c0_i32_0 = arith.constant 0 : i32
    %c0_i32_1 = arith.constant 0 : i32
    return %c0_i32, %c0_i32_0 : i32, i32
  }
}

</mosaic_0001>

<bundles_post_ra>
// kernel: tpu_custom_call.1
= control target key start
LH: loop header
LB: loop body
LE: loop exit
PB: predicated region body
PF: predicated region fallthrough
CT: control target
= control target key end

     0   :  { %7 = vsyncpa [#allocation5], 0  ;;  %s309_s0 = inlined_call_operand.hbm [shape: bf16[1,512], index: 0, kind: input, shape index: {}]   ;;  %s310_s1 = inlined_call_operand.hbm [shape: bf16[1,512], index: 1, kind: input, shape index: {}]   ;;  %s311_s2 = inlined_call_operand.hbm [shape: f32[1,1], index: 2, kind: output, shape index: {}]  }
   0x1   :  { %8 = vsyncpa [#allocation8], 0 }
   0x2   :  { %9 = vsyncpa [#allocation6], 0  ;;  %s260_s9 = smov [#allocation4]   ;;  %s261_s11 = smov [#allocation7]  }
   0x3   :  { %s16_s10 = sshll.u32 %s260_s9, 4  ;;  %s26_s12 = sshll.u32 %s261_s11, 4  ;;  %s17_s10 = int_to_ptr.vmem [resolvable:$true] %s16_s10  ;;  %s27_s12 = int_to_ptr.vmem [resolvable:$true] %s26_s12 }
   0x4   :  { %s214_s13 = scalar_lea.vmem %s17_s10, 64  ;;  %p219_p1 = scmp.lt.s32.totalorder %s17_s10, %s17_s10 }
   0x5   :  { %p215_p0 = scmp.ne.s32.totalorder %s17_s10, %s214_s13  ;;  %p220_p2 = scmp.lt.s32.totalorder %s214_s13, %s214_s13 }
   0x7   :  { %p221_p3 = por %p220_p2, %p219_p1 }
   0x9   :  { %p222_p4 = pnand %p221_p3, %p215_p0 }
   0xb   :  { %225 = shalt.err (!%p222_p4)
}
   0xc   :  { %19 = dma.hbm_to_vmem [thread:$0]  %s309_s0, 64, %s17_s10, [#allocation5]  }
   0xd   :  { %s234_s16 = scalar_lea.vmem %s27_s12, 64  ;;  %p239_p6 = scmp.lt.s32.totalorder %s27_s12, %s27_s12 }
   0xe   :  { %p235_p5 = scmp.ne.s32.totalorder %s27_s12, %s234_s16  ;;  %p240_p7 = scmp.lt.s32.totalorder %s234_s16, %s234_s16 }
  0x10   :  { %p241_p8 = por %p240_p7, %p239_p6 }
  0x12   :  { %p242_p9 = pnand %p241_p8, %p235_p5 }
  0x14   :  { %245 = shalt.err (!%p242_p9)
}
  0x15   :  { %29 = dma.hbm_to_vmem [thread:$0]  %s310_s1, 64, %s27_s12, [#allocation8]  }
  0x16   :  { %254 = dma.done.wait [#allocation5], 64  }
  0x17   :  { %255 = vsyncadd [#allocation5], 4294967232 }
  0x18   :  { %256 = dma.done.wait [#allocation8], 64  }
  0x19   :  { %257 = vsyncadd [#allocation8], 4294967232  ;;  %v40_v0 = vlaneseq  ;;  %v262_v2 = vmov 0.0   ;;  %v46_v3 = vld [vmem:[#allocation4] sm:$0xf]  ;;  %vm111_vm1 = vcmask 1040384  }
  0x1a   :  { %v47_v4 = vunpack.c.l.bf16 %v46_v3  ;;  %v263_v6 = vmov 1966171168   ;;  %v48_v8 = vld [vmem:[#allocation7] sm:$0xf]  ;;  %s264_s25 = smov [#allocation9]  }
  0x1b   :  { %vm286_vm0 = vcmp.lt.s32.totalorder %v40_v0, 512  ;;  %v60_v7 = vunpack.c.l.s4 %v263_v6  ;;  %v63_v10 = vshrl.u32 %v40_v0, 7  ;;  %v49_v12 = vunpack.c.l.bf16 %v48_v8 }
  0x1c   :  { %44 = vst.msk [vmem:[#allocation2] sm:$0xf] %vm286_vm0, %v262_v2  ;;  %45 = vst.msk [vmem:[#allocation3] sm:$0xf] %vm286_vm0, %v262_v2  ;;  %v50_v5 = vmul.f32 0.5, %v47_v4 }
  0x1d   :  { %v61_v9 = vunpack.c.0.s8 %v60_v7  ;;  %v93_v24 = vsub.s32 0, %v63_v10  ;;  %v97_v25 = vsub.s32 1, %v63_v10  ;;  %v101_v26 = vsub.s32 2, %v63_v10 }
  0x1e   :  { %202 = vtanh.f32 %v50_v5  ;;  %v105_v27 = vsub.s32 3, %v63_v10 }
  0x1f   :  { %v64_v15 = vsub.s32 %v61_v9, %v63_v10 }
  0x23   :  { %v56_v18 = vld [vmem:[#allocation2] sm:$0xf]  ;;  %v73_v19 = vld [vmem:[#allocation3] sm:$0xf] }
  0x2b   :  { %v203_v11 = vpop.eup %202 }
  0x2c   :  { %v52_v13 = vadd.f32 1.0, %v203_v11 }
  0x2e   :  { %v53_v14 = vmul.f32 0.5, %v52_v13 }
  0x30   :  { %v54_v16 = vmul.f32 %v53_v14, %v49_v12  ;;  %v55_v17 = vadd.f32 %v53_v14, %v49_v12 }
  0x32   :  { %v65_v20 = vrot.slane %v54_v16, %v64_v15  ;;  %v82_v21 = vrot.slane %v55_v17, %v64_v15 }
  0x34   :  { %v67_v22 = vadd.f32 %v65_v20, %v56_v18  ;;  %v84_v23 = vadd.f32 %v82_v21, %v73_v19 }
  0x36   :  { %72 = vst.msk [vmem:[#allocation2] sm:$0xf] %vm286_vm0, %v67_v22  ;;  %85 = vst.msk [vmem:[#allocation3] sm:$0xf] %vm286_vm0, %v84_v23 }
  0x3d   :  { %v89_v28 = vld [vmem:[#allocation2] sm:$0xf]  ;;  %v128_v29 = vld [vmem:[#allocation3] sm:$0xf] }
  0x3e   :  { %v94_v30 = vrot.slane %v89_v28, %v93_v24  ;;  %v98_v31 = vrot.slane %v89_v28, %v97_v25  ;;  %v102_v32 = vrot.slane %v89_v28, %v101_v26  ;;  %v106_v33 = vrot.slane %v89_v28, %v105_v27 }
  0x3f   :  { %v133_v34 = vrot.slane %v128_v29, %v93_v24  ;;  %v137_v35 = vrot.slane %v128_v29, %v97_v25  ;;  %v141_v36 = vrot.slane %v128_v29, %v101_v26  ;;  %v145_v40 = vrot.slane %v128_v29, %v105_v27 }
  0x40   :  { %v112_v37 = vsel %vm111_vm1, %v94_v30, 0.0  ;;  %v113_v38 = vsel %vm111_vm1, %v98_v31, 0.0  ;;  %v115_v39 = vsel %vm111_vm1, %v102_v32, 0.0  ;;  %v117_v45 = vsel %vm111_vm1, %v106_v33, 0.0 }
  0x41   :  { %v114_v41 = vadd.f32 %v113_v38, %v112_v37  ;;  %v150_v42 = vsel %vm111_vm1, %v133_v34, 0.0  ;;  %v151_v43 = vsel %vm111_vm1, %v137_v35, 0.0  ;;  %v153_v44 = vsel %vm111_vm1, %v141_v36, 0.0 }
  0x42   :  { %v152_v46 = vadd.f32 %v151_v43, %v150_v42  ;;  %v155_v49 = vsel %vm111_vm1, %v145_v40, 0.0 }
  0x43   :  { %v116_v47 = vadd.f32 %v115_v39, %v114_v41 }
  0x44   :  { %v154_v48 = vadd.f32 %v153_v44, %v152_v46 }
  0x45   :  { %v118_v50 = vadd.f32 %v117_v45, %v116_v47 }
  0x46   :  { %v156_v51 = vadd.f32 %v155_v49, %v154_v48 }
  0x47   :  { %119 = vadd.xlane.f32.xlu0 %v118_v50 }
  0x4b   :  { %157 = vadd.xlane.f32.xlu0 %v156_v51 }
  0xd0   :  { %v120_v52 = vpop.xlane.xlu0 %119 }
  0xd1   :  { %v121_v53 = vrot.slane %v120_v52, 4 }
  0xd3   :  { %v122_v54 = vadd.f32 %v121_v53, %v120_v52 }
  0xd4   :  { %v158_v55 = vpop.xlane.xlu0 %157 }
  0xd5   :  { %v123_v56 = vrot.slane %v122_v54, 2  ;;  %v159_v57 = vrot.slane %v158_v55, 4 }
  0xd7   :  { %v160_v58 = vadd.f32 %v159_v57, %v158_v55  ;;  %v124_v59 = vadd.f32 %v123_v56, %v122_v54 }
  0xd9   :  { %v161_v60 = vrot.slane %v160_v58, 2  ;;  %v125_v61 = vrot.slane %v124_v59, 1 }
  0xdb   :  { %v162_v62 = vadd.f32 %v161_v60, %v160_v58  ;;  %v126_v63 = vadd.f32 %v125_v61, %v124_v59 }
  0xdd   :  { %191 = vpush %v126_v63  ;;  %v163_v0 = vrot.slane %v162_v62, 1 }
  0xdf   :  { %v164_v1 = vadd.f32 %v163_v0, %v162_v62 }
  0xe1   :  { %193 = vpush %v164_v1 }
 0x10e   :  { %s192_s0 = spop %191 }
 0x10f   :  { %s167_s21 = sadd.f32 1e-07, %s192_s0 }
 0x112   :  { %s194_s1 = spop %193 }
 0x113   :  { %s166_s19 = ssub.f32 %s194_s1, %s192_s0 }
 0x115   :  { %s168_s20 = sadd.f32 1e-07, %s166_s19 }
 0x117   :  { %v169_v2 = vstv %s168_s20 }
 0x118   :  { %204 = vrcp.f32 %v169_v2 }
 0x125   :  { %v205_v3 = vpop.eup %204 }
 0x126   :  { %195 = vpush %v205_v3 }
 0x157   :  { %s196_s22 = spop %195 }
 0x158   :  { %s172_s23 = smul.f32 %s196_s22, %s167_s21 }
 0x15a   :  { %s173_s24 = ssub.f32 1.0, %s172_s23 }
 0x15c   :  { %175 = sst [smem:[#allocation9]] %s173_s24 }
 0x15d   :  { %183 = dma.smem_to_hbm %s264_s25, 16, %s311_s2, [#allocation6]  }
 0x15e   :  { %258 = dma.done.wait [#allocation6], 16  }
 0x15f   :  { %259 = vsyncadd [#allocation6], 4294967280 }
 0x160   :  { %187 = sfence }
 0x161   :  { %188 = vsyncpa [#allocation5], 1 }
 0x162   :  { %189 = vsyncpa [#allocation8], 1 }
 0x163   :  { %190 = vsyncpa [#allocation6], 1 }

</bundles_post_ra>
